<compile_context>
chip_gen: v7x
topology: tpu7x:2x2x1
jax: 0.10.0
libtpu: 0.0.40
codegen_flags: <defaults>
</compile_context>

<pallas_src>
import functools

import jax
import jax.numpy as jnp
from jax.experimental import pallas as pl
from jax.experimental.pallas import tpu as pltpu


def _convbn_lrelu_kernel(x_ref, wb_ref, cm_ref, em_ref, gb_ref, o_ref,
                         slab_ref, stats_ref, *, kh_size, oh, inv_count):
    """Fused conv -> BN(train) -> LeakyReLU, two-phase grid (phase, batch tile)."""
    p = pl.program_id(0)          # 0: conv + stats, 1: BN affine + LeakyReLU
    i = pl.program_id(1)          # batch tile index

    @pl.when(p == 0)
    def _conv_and_stats():
        @pl.when(i == 0)
        def _init():
            stats_ref[...] = jnp.zeros_like(stats_ref)

        x = x_ref[0]                                        # (H, W*Cin), natural layout
        # KH accumulating matmuls against the banded weights: contraction over
        # the full (W*Cin) lane axis, zero in-kernel gather/relayout.
        acc = jnp.dot(x[0:oh, :], wb_ref[0],
                      preferred_element_type=jnp.float32)   # (OH, OW*Cout) f32
        for kh in range(1, kh_size):
            acc += jnp.dot(x[kh:kh + oh, :], wb_ref[kh],
                           preferred_element_type=jnp.float32)

        slab_ref[i] = acc                                   # stays in VMEM

        # Per-channel partial stats: sublane reduce + tiny comb matmul (MXU is idle).
        colsum = jnp.sum(acc, axis=0, keepdims=True)        # (1, OW*Cout)
        colsq = jnp.sum(acc * acc, axis=0, keepdims=True)   # (1, OW*Cout)
        stats_ref[0:1, :] += jnp.dot(colsum, cm_ref[...],
                                     preferred_element_type=jnp.float32)
        stats_ref[1:2, :] += jnp.dot(colsq, cm_ref[...],
                                     preferred_element_type=jnp.float32)

    @pl.when(p == 1)
    def _bn_lrelu():
        mean = stats_ref[0:1, :] * inv_count                # (1, Cout)
        var = jnp.maximum(stats_ref[1:2, :] * inv_count - mean * mean, 0.0)
        scale = gb_ref[0:1, :] * jax.lax.rsqrt(var + 1e-5)  # gamma * rsqrt(var+eps)
        shift = gb_ref[1:2, :] - mean * scale               # beta - mean*scale
        # Broadcast per-channel constants to the interleaved (ow, co) lane layout.
        scale_t = jnp.dot(scale, em_ref[...], preferred_element_type=jnp.float32)
        shift_t = jnp.dot(shift, em_ref[...], preferred_element_type=jnp.float32)

        y = slab_ref[i] * scale_t + shift_t                 # single FMA over the slab
        o_ref[0] = jnp.where(y > 0.0, y, 0.2 * y).astype(o_ref.dtype)


@jax.jit
def conv_block(x_nchw, w_oihw, b, gamma, beta):
    """Forward of ConvBlock. Inputs/weights in PyTorch layout (NCHW / OIHW)."""
    del b  # per-channel conv bias is cancelled by training-mode BN mean subtraction

    N, Cin, H, W = x_nchw.shape
    Cout, _, KH, KW = w_oihw.shape
    OH, OW = H - KH + 1, W - KW + 1                     # stride=1, padding=0
    WC = W * Cin                                        # input lane width
    OWC = OW * Cout                                     # output lane width (lane-dense)

    # Input as (N, H, W*Cin) — the natural NHWC memory layout, free reshape.
    x2 = jnp.transpose(x_nchw, (0, 2, 3, 1)).reshape(N, H, WC)

    # Banded (block-Toeplitz) weights, one band per kh:
    #   wband[kh, (ow+kw)*Cin + c, ow*Cout + co] = w[kh, kw, c, co]
    w_hwio = jnp.transpose(w_oihw, (2, 3, 1, 0)).astype(x2.dtype)   # (KH,KW,Cin,Cout)
    wk = w_hwio.reshape(KH, KW * Cin, Cout)
    wband = jnp.zeros((KH, WC, OW, Cout), x2.dtype)
    for ow in range(OW):                                # tiny, built once per call
        wband = wband.at[:, ow * Cin: ow * Cin + KW * Cin, ow, :].set(wk)
    wband = wband.reshape(KH, WC, OWC)

    # Comb matrices: per-channel reduce / broadcast over the (ow, co) lane layout.
    em = jnp.tile(jnp.eye(Cout, dtype=jnp.float32), (1, OW))        # (Cout, OWC)
    cm = em.T                                                       # (OWC, Cout)
    gb = jnp.stack([gamma, beta]).astype(jnp.float32)               # (2, Cout)

    NB = 1                                 # images per grid step (scale up for big N)
    assert N % NB == 0, "batch must divide evenly into tiles"
    num_tiles = N // NB

    # Fused design keeps the whole conv slab in VMEM; check the budget
    # (keep well under ~24 MiB so it also fits the 64 MiB/TC v7x parts).
    slab_bytes = N * OH * OWC * 4
    assert slab_bytes <= 16 * 1024 * 1024, "conv slab too large for fused VMEM kernel"

    kernel = functools.partial(_convbn_lrelu_kernel, kh_size=KH, oh=OH,
                               inv_count=1.0 / float(N * OH * OW))

    out_rows = pl.pallas_call(
        kernel,
        out_shape=jax.ShapeDtypeStruct((N, OH, OWC), x2.dtype),
        grid_spec=pltpu.PrefetchScalarGridSpec(
            num_scalar_prefetch=0,
            grid=(2, num_tiles),                        # (phase, batch tile)
            in_specs=[
                # x: fetched per tile in phase 0; pinned to block 0 in phase 1.
                pl.BlockSpec((NB, H, WC), lambda p, i: (i * (1 - p), 0, 0)),
                pl.BlockSpec((KH, WC, OWC), lambda p, i: (0, 0, 0)),
                pl.BlockSpec((OWC, Cout), lambda p, i: (0, 0)),
                pl.BlockSpec((Cout, OWC), lambda p, i: (0, 0)),
                pl.BlockSpec((2, Cout), lambda p, i: (0, 0)),
            ],
            # Output blocks only advance in phase 1, so each block is flushed
            # exactly once, after its real write.
            out_specs=pl.BlockSpec((NB, OH, OWC), lambda p, i: (i * p, 0, 0)),
            scratch_shapes=[
                pltpu.VMEM((num_tiles, NB * OH, OWC), jnp.float32),  # conv slab
                pltpu.VMEM((2, Cout), jnp.float32),                  # sum / sumsq
            ]),
        compiler_params=pltpu.CompilerParams(
            dimension_semantics=("arbitrary", "arbitrary"),
            vmem_limit_bytes=32 * 1024 * 1024),
    )(x2, wband, cm, em, gb)

    # (N, OH, OW*Cout) is NHWC flattened -> free reshape + one small transpose.
    out_nhwc = out_rows.reshape(N, OH, OW, Cout)
    return jnp.transpose(out_nhwc, (0, 3, 1, 2))


def _reference(x_nchw, w_oihw, b, gamma, beta):
    """Pure-JAX reference mirroring the PyTorch forward (incl. conv bias)."""
    conv = jax.lax.conv_general_dilated(
        x_nchw, w_oihw, window_strides=(1, 1), padding="VALID",
        dimension_numbers=("NCHW", "OIHW", "NCHW"))
    conv = conv + b.reshape(1, -1, 1, 1)
    mean = conv.mean(axis=(0, 2, 3), keepdims=True)
    var = ((conv - mean) ** 2).mean(axis=(0, 2, 3), keepdims=True)
    xhat = (conv - mean) / jnp.sqrt(var + 1e-5)
    y = xhat * gamma.reshape(1, -1, 1, 1) + beta.reshape(1, -1, 1, 1)
    return jnp.where(y > 0, y, 0.2 * y)


if __name__ == "__main__":
    # Small shapes consistent with the module: batch=2, Cin=4, Cout=8, K=3, 16x16.
    N, Cin, Cout, K, H, W = 2, 4, 8, 3, 16, 16

    key = jax.random.PRNGKey(0)
    kx, kw, kb = jax.random.split(key, 3)

    x = jax.random.normal(kx, (N, Cin, H, W), dtype=jnp.float32)

    # Conv2d-style init (kaiming-uniform-ish bound = 1/sqrt(fan_in)).
    fan_in = Cin * K * K
    bound = 1.0 / jnp.sqrt(jnp.float32(fan_in))
    w = jax.random.uniform(kw, (Cout, Cin, K, K), jnp.float32, -bound, bound)
    b = jax.random.uniform(kb, (Cout,), jnp.float32, -bound, bound)

    # BatchNorm2d default affine params.
    gamma = jnp.ones((Cout,), jnp.float32)
    beta = jnp.zeros((Cout,), jnp.float32)

    out = conv_block(x, w, b, gamma, beta)
    out = jax.block_until_ready(out)

    ref = _reference(x, w, b, gamma, beta)
    assert out.shape == (N, Cout, H - K + 1, W - K + 1), out.shape
    assert jnp.allclose(out, ref, rtol=1e-4, atol=1e-4), (
        float(jnp.max(jnp.abs(out - ref))))

    print("KERNEL_OK")
</pallas_src>

<mosaic_0001>
module attributes {stable_mosaic.version = 11 : i64} {
  func.func @_convbn_lrelu_kernel(%arg0: i32, %arg1: i32, %arg2: memref<1x16x64xf32, #tpu.memory_space<vmem>>, %arg3: memref<3x64x112xf32, #tpu.memory_space<vmem>>, %arg4: memref<112x8xf32, #tpu.memory_space<vmem>>, %arg5: memref<8x112xf32, #tpu.memory_space<vmem>>, %arg6: memref<2x8xf32, #tpu.memory_space<vmem>>, %arg7: memref<1x14x112xf32, #tpu.memory_space<vmem>>, %arg8: memref<2x14x112xf32, #tpu.memory_space<vmem>>, %arg9: memref<2x8xf32, #tpu.memory_space<vmem>>) attributes {dimension_semantics = [#tpu.dimension_semantics<arbitrary>, #tpu.dimension_semantics<arbitrary>], iteration_bounds = array<i64: 2, 2>, scalar_prefetch = 0 : i64, scratch_operands = 2 : i64, tpu.core_type = #tpu.core_type<tc>, window_params = [{transform_indices = @transform_0, window_bounds = array<i64: 1, 16, 64>}, {pipeline_mode = #tpu.pipeline_mode<synchronous>, transform_indices = @transform_1, window_bounds = array<i64: 3, 64, 112>}, {pipeline_mode = #tpu.pipeline_mode<synchronous>, transform_indices = @transform_2, window_bounds = array<i64: 112, 8>}, {pipeline_mode = #tpu.pipeline_mode<synchronous>, transform_indices = @transform_3, window_bounds = array<i64: 8, 112>}, {pipeline_mode = #tpu.pipeline_mode<synchronous>, transform_indices = @transform_4, window_bounds = array<i64: 2, 8>}, {transform_indices = @transform_5, window_bounds = array<i64: 1, 14, 112>}]} {
    %c0_i32 = arith.constant 0 : i32
    %0 = arith.cmpi eq, %arg0, %c0_i32 : i32
    %1 = arith.extui %0 : i1 to i32
    %c0_i32_0 = arith.constant 0 : i32
    %2 = arith.cmpi ne, %1, %c0_i32_0 : i32
    scf.if %2 {
      %c0_i32_2 = arith.constant 0 : i32
      %6 = arith.cmpi eq, %arg1, %c0_i32_2 : i32
      %7 = arith.extui %6 : i1 to i32
      %c0_i32_3 = arith.constant 0 : i32
      %8 = arith.cmpi ne, %7, %c0_i32_3 : i32
      scf.if %8 {
        %cst_33 = arith.constant 0.000000e+00 : f32
        %44 = vector.broadcast %cst_33 : f32 to vector<2x8xf32>
        %c0_34 = arith.constant 0 : index
        %c0_35 = arith.constant 0 : index
        %45 = vector.load %arg9[%c0_34, %c0_35] : memref<2x8xf32, #tpu.memory_space<vmem>>, vector<2x8xf32>
        tpu.vector_store %arg9[%c0_34, %c0_35], %44 {strides = array<i32>} : memref<2x8xf32, #tpu.memory_space<vmem>>, vector<2x8xf32>,
      } else {
      }
      %c0 = arith.constant 0 : index
      %c0_4 = arith.constant 0 : index
      %c0_5 = arith.constant 0 : index
      %9 = vector.load %arg2[%c0, %c0_4, %c0_5] : memref<1x16x64xf32, #tpu.memory_space<vmem>>, vector<1x16x64xf32>
      %10 = vector.shape_cast %9 : vector<1x16x64xf32> to vector<16x64xf32>
      %11 = vector.extract_strided_slice %10 {offsets = [0, 0], sizes = [14, 64], strides = [1, 1]} : vector<16x64xf32> to vector<14x64xf32>
      %c0_6 = arith.constant 0 : index
      %c0_7 = arith.constant 0 : index
      %c0_8 = arith.constant 0 : index
      %12 = vector.load %arg3[%c0_6, %c0_7, %c0_8] : memref<3x64x112xf32, #tpu.memory_space<vmem>>, vector<1x64x112xf32>
      %13 = vector.shape_cast %12 : vector<1x64x112xf32> to vector<64x112xf32>
      %cst = arith.constant dense<0.000000e+00> : vector<14x112xf32>
      %14 = tpu.matmul %11, %13, %cst {dimension_numbers = #tpu.dot_dimension_numbers<[1], [0], [0], [1], [0, 0, 1, 1], [], []>} : vector<14x64xf32>, vector<64x112xf32>, vector<14x112xf32> -> vector<14x112xf32>
      %15 = vector.extract_strided_slice %10 {offsets = [1, 0], sizes = [14, 64], strides = [1, 1]} : vector<16x64xf32> to vector<14x64xf32>
      %c1 = arith.constant 1 : index
      %c0_9 = arith.constant 0 : index
      %c0_10 = arith.constant 0 : index
      %16 = vector.load %arg3[%c1, %c0_9, %c0_10] : memref<3x64x112xf32, #tpu.memory_space<vmem>>, vector<1x64x112xf32>
      %17 = vector.shape_cast %16 : vector<1x64x112xf32> to vector<64x112xf32>
      %cst_11 = arith.constant dense<0.000000e+00> : vector<14x112xf32>
      %18 = tpu.matmul %15, %17, %cst_11 {dimension_numbers = #tpu.dot_dimension_numbers<[1], [0], [0], [1], [0, 0, 1, 1], [], []>} : vector<14x64xf32>, vector<64x112xf32>, vector<14x112xf32> -> vector<14x112xf32>
      %19 = arith.addf %14, %18 : vector<14x112xf32>
      %20 = vector.extract_strided_slice %10 {offsets = [2, 0], sizes = [14, 64], strides = [1, 1]} : vector<16x64xf32> to vector<14x64xf32>
      %c2 = arith.constant 2 : index
      %c0_12 = arith.constant 0 : index
      %c0_13 = arith.constant 0 : index
      %21 = vector.load %arg3[%c2, %c0_12, %c0_13] : memref<3x64x112xf32, #tpu.memory_space<vmem>>, vector<1x64x112xf32>
      %22 = vector.shape_cast %21 : vector<1x64x112xf32> to vector<64x112xf32>
      %cst_14 = arith.constant dense<0.000000e+00> : vector<14x112xf32>
      %23 = tpu.matmul %20, %22, %cst_14 {dimension_numbers = #tpu.dot_dimension_numbers<[1], [0], [0], [1], [0, 0, 1, 1], [], []>} : vector<14x64xf32>, vector<64x112xf32>, vector<14x112xf32> -> vector<14x112xf32>
      %24 = arith.addf %19, %23 : vector<14x112xf32>
      %25 = arith.index_cast %arg1 : i32 to index
      %c0_15 = arith.constant 0 : index
      %c0_16 = arith.constant 0 : index
      %26 = vector.load %arg8[%25, %c0_15, %c0_16] : memref<2x14x112xf32, #tpu.memory_space<vmem>>, vector<1x14x112xf32>
      %27 = vector.shape_cast %26 : vector<1x14x112xf32> to vector<14x112xf32>
      %28 = vector.shape_cast %24 : vector<14x112xf32> to vector<1x14x112xf32>
      tpu.vector_store %arg8[%25, %c0_15, %c0_16], %28 {strides = array<i32>} : memref<2x14x112xf32, #tpu.memory_space<vmem>>, vector<1x14x112xf32>,
      %cst_17 = arith.constant dense<0.000000e+00> : vector<112xf32>
      %29 = vector.multi_reduction <add>, %24, %cst_17 [0] : vector<14x112xf32> to vector<112xf32>
      %30 = vector.shape_cast %29 : vector<112xf32> to vector<1x112xf32>
      %31 = arith.mulf %24, %24 : vector<14x112xf32>
      %cst_18 = arith.constant dense<0.000000e+00> : vector<112xf32>
      %32 = vector.multi_reduction <add>, %31, %cst_18 [0] : vector<14x112xf32> to vector<112xf32>
      %33 = vector.shape_cast %32 : vector<112xf32> to vector<1x112xf32>
      %c0_19 = arith.constant 0 : index
      %c0_20 = arith.constant 0 : index
      %34 = vector.load %arg9[%c0_19, %c0_20] : memref<2x8xf32, #tpu.memory_space<vmem>>, vector<1x8xf32>
      %c0_21 = arith.constant 0 : index
      %c0_22 = arith.constant 0 : index
      %35 = vector.load %arg4[%c0_21, %c0_22] : memref<112x8xf32, #tpu.memory_space<vmem>>, vector<112x8xf32>
      %cst_23 = arith.constant dense<0.000000e+00> : vector<1x8xf32>
      %36 = tpu.matmul %30, %35, %cst_23 {dimension_numbers = #tpu.dot_dimension_numbers<[1], [0], [0], [1], [0, 0, 1, 1], [], []>} : vector<1x112xf32>, vector<112x8xf32>, vector<1x8xf32> -> vector<1x8xf32>
      %37 = arith.addf %34, %36 : vector<1x8xf32>
      %c0_24 = arith.constant 0 : index
      %c0_25 = arith.constant 0 : index
      %38 = vector.load %arg9[%c0_24, %c0_25] : memref<2x8xf32, #tpu.memory_space<vmem>>, vector<1x8xf32>
      tpu.vector_store %arg9[%c0_24, %c0_25], %37 {strides = array<i32>} : memref<2x8xf32, #tpu.memory_space<vmem>>, vector<1x8xf32>,
      %c1_26 = arith.constant 1 : index
      %c0_27 = arith.constant 0 : index
      %39 = vector.load %arg9[%c1_26, %c0_27] : memref<2x8xf32, #tpu.memory_space<vmem>>, vector<1x8xf32>
      %c0_28 = arith.constant 0 : index
      %c0_29 = arith.constant 0 : index
      %40 = vector.load %arg4[%c0_28, %c0_29] : memref<112x8xf32, #tpu.memory_space<vmem>>, vector<112x8xf32>
      %cst_30 = arith.constant dense<0.000000e+00> : vector<1x8xf32>
      %41 = tpu.matmul %33, %40, %cst_30 {dimension_numbers = #tpu.dot_dimension_numbers<[1], [0], [0], [1], [0, 0, 1, 1], [], []>} : vector<1x112xf32>, vector<112x8xf32>, vector<1x8xf32> -> vector<1x8xf32>
      %42 = arith.addf %39, %41 : vector<1x8xf32>
      %c1_31 = arith.constant 1 : index
      %c0_32 = arith.constant 0 : index
      %43 = vector.load %arg9[%c1_31, %c0_32] : memref<2x8xf32, #tpu.memory_space<vmem>>, vector<1x8xf32>
      tpu.vector_store %arg9[%c1_31, %c0_32], %42 {strides = array<i32>} : memref<2x8xf32, #tpu.memory_space<vmem>>, vector<1x8xf32>,
    } else {
    }
    %c1_i32 = arith.constant 1 : i32
    %3 = arith.cmpi eq, %arg0, %c1_i32 : i32
    %4 = arith.extui %3 : i1 to i32
    %c0_i32_1 = arith.constant 0 : i32
    %5 = arith.cmpi ne, %4, %c0_i32_1 : i32
    scf.if %5 {
      %c0 = arith.constant 0 : index
      %c0_2 = arith.constant 0 : index
      %6 = vector.load %arg9[%c0, %c0_2] : memref<2x8xf32, #tpu.memory_space<vmem>>, vector<1x8xf32>
      %cst = arith.constant 0.00255102036 : f32
      %7 = vector.broadcast %cst : f32 to vector<1x8xf32>
      %8 = arith.mulf %6, %7 : vector<1x8xf32>
      %c1 = arith.constant 1 : index
      %c0_3 = arith.constant 0 : index
      %9 = vector.load %arg9[%c1, %c0_3] : memref<2x8xf32, #tpu.memory_space<vmem>>, vector<1x8xf32>
      %cst_4 = arith.constant 0.00255102036 : f32
      %10 = vector.broadcast %cst_4 : f32 to vector<1x8xf32>
      %11 = arith.mulf %9, %10 : vector<1x8xf32>
      %12 = arith.mulf %8, %8 : vector<1x8xf32>
      %13 = arith.subf %11, %12 : vector<1x8xf32>
      %cst_5 = arith.constant 0.000000e+00 : f32
      %14 = vector.broadcast %cst_5 : f32 to vector<1x8xf32>
      %15 = arith.maximumf %13, %14 : vector<1x8xf32>
      %c0_6 = arith.constant 0 : index
      %c0_7 = arith.constant 0 : index
      %16 = vector.load %arg6[%c0_6, %c0_7] : memref<2x8xf32, #tpu.memory_space<vmem>>, vector<1x8xf32>
      %cst_8 = arith.constant 9.99999974E-6 : f32
      %17 = vector.broadcast %cst_8 : f32 to vector<1x8xf32>
      %18 = arith.addf %15, %17 : vector<1x8xf32>
      %19 = math.rsqrt %18 : vector<1x8xf32>
      %20 = arith.mulf %16, %19 : vector<1x8xf32>
      %c1_9 = arith.constant 1 : index
      %c0_10 = arith.constant 0 : index
      %21 = vector.load %arg6[%c1_9, %c0_10] : memref<2x8xf32, #tpu.memory_space<vmem>>, vector<1x8xf32>
      %22 = arith.mulf %8, %20 : vector<1x8xf32>
      %23 = arith.subf %21, %22 : vector<1x8xf32>
      %c0_11 = arith.constant 0 : index
      %c0_12 = arith.constant 0 : index
      %24 = vector.load %arg5[%c0_11, %c0_12] : memref<8x112xf32, #tpu.memory_space<vmem>>, vector<8x112xf32>
      %cst_13 = arith.constant dense<0.000000e+00> : vector<1x112xf32>
      %25 = tpu.matmul %20, %24, %cst_13 {dimension_numbers = #tpu.dot_dimension_numbers<[1], [0], [0], [1], [0, 0, 1, 1], [], []>} : vector<1x8xf32>, vector<8x112xf32>, vector<1x112xf32> -> vector<1x112xf32>
      %c0_14 = arith.constant 0 : index
      %c0_15 = arith.constant 0 : index
      %26 = vector.load %arg5[%c0_14, %c0_15] : memref<8x112xf32, #tpu.memory_space<vmem>>, vector<8x112xf32>
      %cst_16 = arith.constant dense<0.000000e+00> : vector<1x112xf32>
      %27 = tpu.matmul %23, %26, %cst_16 {dimension_numbers = #tpu.dot_dimension_numbers<[1], [0], [0], [1], [0, 0, 1, 1], [], []>} : vector<1x8xf32>, vector<8x112xf32>, vector<1x112xf32> -> vector<1x112xf32>
      %28 = arith.index_cast %arg1 : i32 to index
      %c0_17 = arith.constant 0 : index
      %c0_18 = arith.constant 0 : index
      %29 = vector.load %arg8[%28, %c0_17, %c0_18] : memref<2x14x112xf32, #tpu.memory_space<vmem>>, vector<1x14x112xf32>
      %30 = vector.shape_cast %29 : vector<1x14x112xf32> to vector<14x112xf32>
      %31 = vector.broadcast %25 : vector<1x112xf32> to vector<14x112xf32>
      %32 = arith.mulf %30, %31 : vector<14x112xf32>
      %33 = vector.broadcast %27 : vector<1x112xf32> to vector<14x112xf32>
      %34 = arith.addf %32, %33 : vector<14x112xf32>
      %cst_19 = arith.constant 0.000000e+00 : f32
      %35 = vector.broadcast %cst_19 : f32 to vector<14x112xf32>
      %36 = arith.cmpf ogt, %34, %35 : vector<14x112xf32>
      %cst_20 = arith.constant 2.000000e-01 : f32
      %37 = vector.broadcast %cst_20 : f32 to vector<14x112xf32>
      %38 = arith.mulf %37, %34 : vector<14x112xf32>
      %39 = arith.select %36, %34, %38 : vector<14x112xi1>, vector<14x112xf32>
      %c0_21 = arith.constant 0 : index
      %c0_22 = arith.constant 0 : index
      %c0_23 = arith.constant 0 : index
      %40 = vector.load %arg7[%c0_21, %c0_22, %c0_23] : memref<1x14x112xf32, #tpu.memory_space<vmem>>, vector<1x14x112xf32>
      %41 = vector.shape_cast %40 : vector<1x14x112xf32> to vector<14x112xf32>
      %42 = vector.shape_cast %39 : vector<14x112xf32> to vector<1x14x112xf32>
      tpu.vector_store %arg7[%c0_21, %c0_22, %c0_23], %42 {strides = array<i32>} : memref<1x14x112xf32, #tpu.memory_space<vmem>>, vector<1x14x112xf32>,
    } else {
    }
    return
  }
  func.func @transform_0(%arg0: i32, %arg1: i32) -> (i32, i32, i32) {
    %c1_i32 = arith.constant 1 : i32
    %0 = arith.subi %c1_i32, %arg0 : i32
    %1 = arith.muli %arg1, %0 : i32
    %c0_i32 = arith.constant 0 : i32
    %c0_i32_0 = arith.constant 0 : i32
    %c0_i32_1 = arith.constant 0 : i32
    return %1, %c0_i32, %c0_i32_0 : i32, i32, i32
  }
  func.func @transform_1(%arg0: i32, %arg1: i32) -> (i32, i32, i32) {
    %c0_i32 = arith.constant 0 : i32
    %c0_i32_0 = arith.constant 0 : i32
    %c0_i32_1 = arith.constant 0 : i32
    %c0_i32_2 = arith.constant 0 : i32
    return %c0_i32, %c0_i32_0, %c0_i32_1 : i32, i32, i32
  }
  func.func @transform_2(%arg0: i32, %arg1: i32) -> (i32, i32) {
    %c0_i32 = arith.constant 0 : i32
    %c0_i32_0 = arith.constant 0 : i32
    %c0_i32_1 = arith.constant 0 : i32
    return %c0_i32, %c0_i32_0 : i32, i32
  }
  func.func @transform_3(%arg0: i32, %arg1: i32) -> (i32, i32) {
    %c0_i32 = arith.constant 0 : i32
    %c0_i32_0 = arith.constant 0 : i32
    %c0_i32_1 = arith.constant 0 : i32
    return %c0_i32, %c0_i32_0 : i32, i32
  }
  func.func @transform_4(%arg0: i32, %arg1: i32) -> (i32, i32) {
    %c0_i32 = arith.constant 0 : i32
    %c0_i32_0 = arith.constant 0 : i32
    %c0_i32_1 = arith.constant 0 : i32
    return %c0_i32, %c0_i32_0 : i32, i32
  }
  func.func @transform_5(%arg0: i32, %arg1: i32) -> (i32, i32, i32) {
    %0 = arith.muli %arg1, %arg0 : i32
    %c0_i32 = arith.constant 0 : i32
    %c0_i32_0 = arith.constant 0 : i32
    %c0_i32_1 = arith.constant 0 : i32
    return %0, %c0_i32, %c0_i32_0 : i32, i32, i32
  }
}

</mosaic_0001>

<bundles_post_ra>
// kernel: tile.9
= control target key start
LH: loop header
LB: loop body
LE: loop exit
PB: predicated region body
PF: predicated region fallthrough
CT: control target
= control target key end

     0   :  { %vm6_vm0 = vcmask 1043458   ;;  %vm10_vm1 = vcmask 1045508   ;;  %vm14_vm2 = vcmask 1047558   ;;  %s19_s6 = smov 3  ;;  %s22_s7 = smov 12  ;;  %vm16_vm3 = vcmask 64512   ;;  %s644_s0 = inlined_call_operand.vmem [shape: f32[8,14,8], index: 0, kind: input, shape index: {}]   ;;  %s645_s1 = inlined_call_operand.vmem [shape: f32[8,112], index: 1, kind: output, shape index: {}]  }
   0x1   :  { %v304_v0 = vld [vmem:[%s644_s0 + $0xd] ss:$16 sm:%s19_s6]   ;;  %s27_s12 = smov 48  ;;  %s32_s13 = smov 192  ;;  %vm38_vm4 = vcmask 917312   ;;  %vm60_vm5 = vcmask 851712  }
   0x2   :  { %v305_v1 = vld [vmem:[%s644_s0 + $0xd] ss:$16 sm:%s22_s7]   ;;  %s63_s18 = smov 3  ;;  %s66_s21 = smov 12  ;;  %vm82_vm6 = vcmask 786112   ;;  %vm104_vm7 = vcmask 720512  }
   0x3   :  { %v25_v2 = vsel %vm6_vm0, %v305_v1, %v304_v0  ;;  %v306_v3 = vld [vmem:[%s644_s0 + $0xd] ss:$16 sm:%s27_s12]   ;;  %v312_v6 = vld [vmem:[%s644_s0 + $0xb] ss:$16 sm:%s63_s18]   ;;  %s71_s22 = smov 48  ;;  %s76_s27 = smov 192 }
   0x4   :  { %v307_v4 = vld [vmem:[%s644_s0 + $0xd] ss:$16 sm:%s32_s13]   ;;  %v30_v5 = vsel %vm10_vm1, %v306_v3, %v25_v2  ;;  %v313_v8 = vld [vmem:[%s644_s0 + $0xb] ss:$16 sm:%s66_s21]   ;;  %s369_s28 = smov 104   ;;  %s41_s2 = smov 3 }
   0x5   :  { %v35_v7 = vsel %vm14_vm2, %v307_v4, %v30_v5  ;;  %v314_v9 = vld [vmem:[%s644_s0 + $0xb] ss:$16 sm:%s71_s22]   ;;  %v69_v10 = vsel %vm6_vm0, %v313_v8, %v312_v6  ;;  %s44_s3 = smov 12  ;;  %v308_v13 = vld [vmem:[%s644_s0 + $0xc] ss:$16 sm:%s41_s2]   ;;  %s49_s8 = smov 48 }
   0x6   :  { %36 = vrot.lane.b32.xlu0 %v35_v7, %s369_s28  ;;  %v315_v11 = vld [vmem:[%s644_s0 + $0xb] ss:$16 sm:%s76_s27]   ;;  %v74_v12 = vsel %vm10_vm1, %v314_v9, %v69_v10  ;;  %s54_s9 = smov 192  ;;  %s85_s14 = smov 3  ;;  %vm126_vm8 = vcmask 654912   ;;  %vm148_vm9 = vcmask 589312  }
   0x7   :  { %v309_v14 = vld [vmem:[%s644_s0 + $0xc] ss:$16 sm:%s44_s3]   ;;  %v79_v15 = vsel %vm14_vm2, %v315_v11, %v74_v12  ;;  %s370_s15 = smov 88   ;;  %v316_v20 = vld [vmem:[%s644_s0 + $0xa] ss:$16 sm:%s85_s14]   ;;  %s88_s18 = smov 12 }
   0x8   :  { %v47_v16 = vsel %vm6_vm0, %v309_v14, %v308_v13  ;;  %v310_v17 = vld [vmem:[%s644_s0 + $0xc] ss:$16 sm:%s49_s8]   ;;  %80 = vrot.lane.b32.xlu1 %v79_v15, %s370_s15  ;;  %s93_s19 = smov 48  ;;  %s98_s24 = smov 192  ;;  %vm170_vm10 = vcmask 523712   ;;  %vm192_vm11 = vcmask 458112  }
   0x9   :  { %v311_v18 = vld [vmem:[%s644_s0 + $0xc] ss:$16 sm:%s54_s9]   ;;  %v52_v19 = vsel %vm10_vm1, %v310_v17, %v47_v16  ;;  %v317_v22 = vld [vmem:[%s644_s0 + $0xa] ss:$16 sm:%s88_s18]   ;;  %s371_s25 = smov 96   ;;  %s107_s28 = smov 3 }
   0xa   :  { %v57_v21 = vsel %vm14_vm2, %v311_v18, %v52_v19  ;;  %v318_v23 = vld [vmem:[%s644_s0 + $0xa] ss:$16 sm:%s93_s19]   ;;  %v91_v24 = vsel %vm6_vm0, %v317_v22, %v316_v20  ;;  %s110_s29 = smov 12  ;;  %v320_v27 = vld [vmem:[%s644_s0 + $0x9] ss:$16 sm:%s107_s28]   ;;  %s115_s5 = smov 48 }
   0xb   :  { %58 = vrot.lane.b32.xlu0 %v57_v21, %s371_s25  ;;  %v319_v25 = vld [vmem:[%s644_s0 + $0xa] ss:$16 sm:%s98_s24]   ;;  %v96_v26 = vsel %vm10_vm1, %v318_v23, %v91_v24  ;;  %s120_s6 = smov 192  ;;  %s129_s11 = smov 3  ;;  %vm214_vm12 = vcmask 392512   ;;  %vm236_vm13 = vcmask 326912  }
   0xc   :  { %v321_v28 = vld [vmem:[%s644_s0 + $0x9] ss:$16 sm:%s110_s29]   ;;  %v101_v29 = vsel %vm14_vm2, %v319_v25, %v96_v26  ;;  %s372_s12 = smov 80   ;;  %v324_v34 = vld [vmem:[%s644_s0 + $0x8] ss:$16 sm:%s129_s11]   ;;  %s132_s15 = smov 12 }
   0xd   :  { %v113_v30 = vsel %vm6_vm0, %v321_v28, %v320_v27  ;;  %v322_v31 = vld [vmem:[%s644_s0 + $0x9] ss:$16 sm:%s115_s5]   ;;  %102 = vrot.lane.b32.xlu1 %v101_v29, %s372_s12  ;;  %s137_s16 = smov 48  ;;  %s142_s21 = smov 192  ;;  %vm258_vm14 = vcmask 261312   ;;  %vm280_vm15 = vcmask 195712  }
   0xe   :  { %v323_v32 = vld [vmem:[%s644_s0 + $0x9] ss:$16 sm:%s120_s6]   ;;  %v118_v33 = vsel %vm10_vm1, %v322_v31, %v113_v30  ;;  %v325_v36 = vld [vmem:[%s644_s0 + $0x8] ss:$16 sm:%s132_s15]   ;;  %s373_s22 = smov 72   ;;  %s151_s25 = smov 3 }
   0xf   :  { %v123_v35 = vsel %vm14_vm2, %v323_v32, %v118_v33  ;;  %v326_v37 = vld [vmem:[%s644_s0 + $0x8] ss:$16 sm:%s137_s16]   ;;  %v135_v38 = vsel %vm6_vm0, %v325_v36, %v324_v34  ;;  %s154_s26 = smov 12  ;;  %v328_v41 = vld [vmem:[%s644_s0 + $0x7] ss:$16 sm:%s151_s25]   ;;  %s159_s2 = smov 48 }
  0x10   :  { %124 = vrot.lane.b32.xlu0 %v123_v35, %s373_s22  ;;  %v327_v39 = vld [vmem:[%s644_s0 + $0x8] ss:$16 sm:%s142_s21]   ;;  %v140_v40 = vsel %vm10_vm1, %v326_v37, %v135_v38  ;;  %s164_s3 = smov 192  ;;  %s173_s8 = smov 3 }
  0x11   :  { %v329_v42 = vld [vmem:[%s644_s0 + $0x7] ss:$16 sm:%s154_s26]   ;;  %v145_v43 = vsel %vm14_vm2, %v327_v39, %v140_v40  ;;  %s374_s9 = smov 64   ;;  %v332_v48 = vld [vmem:[%s644_s0 + $0x6] ss:$16 sm:%s173_s8]   ;;  %s176_s12 = smov 12 }
  0x12   :  { %v157_v44 = vsel %vm6_vm0, %v329_v42, %v328_v41  ;;  %v330_v45 = vld [vmem:[%s644_s0 + $0x7] ss:$16 sm:%s159_s2]   ;;  %146 = vrot.lane.b32.xlu1 %v145_v43, %s374_s9  ;;  %s181_s13 = smov 48  ;;  %s186_s18 = smov 192 }
  0x13   :  { %v331_v46 = vld [vmem:[%s644_s0 + $0x7] ss:$16 sm:%s164_s3]   ;;  %v162_v47 = vsel %vm10_vm1, %v330_v45, %v157_v44  ;;  %v333_v50 = vld [vmem:[%s644_s0 + $0x6] ss:$16 sm:%s176_s12]   ;;  %s375_s19 = smov 56   ;;  %s195_s22 = smov 3 }
  0x14   :  { %v167_v49 = vsel %vm14_vm2, %v331_v46, %v162_v47  ;;  %v334_v51 = vld [vmem:[%s644_s0 + $0x6] ss:$16 sm:%s181_s13]   ;;  %v179_v52 = vsel %vm6_vm0, %v333_v50, %v332_v48  ;;  %s198_s23 = smov 12  ;;  %v336_v55 = vld [vmem:[%s644_s0 + $0x5] ss:$16 sm:%s195_s22]   ;;  %s203_s28 = smov 48 }
  0x15   :  { %168 = vrot.lane.b32.xlu0 %v167_v49, %s375_s19  ;;  %v335_v53 = vld [vmem:[%s644_s0 + $0x6] ss:$16 sm:%s186_s18]   ;;  %v184_v54 = vsel %vm10_vm1, %v334_v51, %v179_v52  ;;  %s208_s29 = smov 192  ;;  %s217_s5 = smov 3 }
  0x16   :  { %v337_v56 = vld [vmem:[%s644_s0 + $0x5] ss:$16 sm:%s198_s23]   ;;  %v189_v57 = vsel %vm14_vm2, %v335_v53, %v184_v54  ;;  %s376_s6 = smov 48   ;;  %v340_v62 = vld [vmem:[%s644_s0 + $0x4] ss:$16 sm:%s217_s5]   ;;  %s220_s9 = smov 12 }
  0x17   :  { %v201_v58 = vsel %vm6_vm0, %v337_v56, %v336_v55  ;;  %v338_v59 = vld [vmem:[%s644_s0 + $0x5] ss:$16 sm:%s203_s28]   ;;  %190 = vrot.lane.b32.xlu1 %v189_v57, %s376_s6  ;;  %s225_s10 = smov 48  ;;  %s230_s15 = smov 192 }
  0x18   :  { %v339_v60 = vld [vmem:[%s644_s0 + $0x5] ss:$16 sm:%s208_s29]   ;;  %v206_v61 = vsel %vm10_vm1, %v338_v59, %v201_v58  ;;  %v341_v0 = vld [vmem:[%s644_s0 + $0x4] ss:$16 sm:%s220_s9]   ;;  %s377_s16 = smov 40   ;;  %s239_s19 = smov 3 }
  0x19   :  { %v211_v63 = vsel %vm14_vm2, %v339_v60, %v206_v61  ;;  %v342_v1 = vld [vmem:[%s644_s0 + $0x4] ss:$16 sm:%s225_s10]   ;;  %v223_v2 = vsel %vm6_vm0, %v341_v0, %v340_v62  ;;  %s242_s20 = smov 12  ;;  %v344_v5 = vld [vmem:[%s644_s0 + $0x3] ss:$16 sm:%s239_s19]   ;;  %s247_s25 = smov 48 }
  0x1a   :  { %212 = vrot.lane.b32.xlu0 %v211_v63, %s377_s16  ;;  %v343_v3 = vld [vmem:[%s644_s0 + $0x4] ss:$16 sm:%s230_s15]   ;;  %v228_v4 = vsel %vm10_vm1, %v342_v1, %v223_v2  ;;  %s252_s26 = smov 192  ;;  %s261_s2 = smov 3 }
  0x1b   :  { %v345_v6 = vld [vmem:[%s644_s0 + $0x3] ss:$16 sm:%s242_s20]   ;;  %v233_v7 = vsel %vm14_vm2, %v343_v3, %v228_v4  ;;  %s378_s3 = smov 32   ;;  %v348_v12 = vld [vmem:[%s644_s0 + $0x2] ss:$16 sm:%s261_s2]   ;;  %s264_s6 = smov 12 }
  0x1c   :  { %v245_v8 = vsel %vm6_vm0, %v345_v6, %v344_v5  ;;  %v346_v9 = vld [vmem:[%s644_s0 + $0x3] ss:$16 sm:%s247_s25]   ;;  %234 = vrot.lane.b32.xlu1 %v233_v7, %s378_s3  ;;  %s269_s7 = smov 48  ;;  %s274_s12 = smov 192 }
  0x1d   :  { %v347_v10 = vld [vmem:[%s644_s0 + $0x3] ss:$16 sm:%s252_s26]   ;;  %v250_v11 = vsel %vm10_vm1, %v346_v9, %v245_v8  ;;  %v349_v14 = vld [vmem:[%s644_s0 + $0x2] ss:$16 sm:%s264_s6]   ;;  %s379_s13 = smov 24   ;;  %s283_s16 = smov 3 }
  0x1e   :  { %v255_v13 = vsel %vm14_vm2, %v347_v10, %v250_v11  ;;  %v350_v15 = vld [vmem:[%s644_s0 + $0x2] ss:$16 sm:%s269_s7]   ;;  %v267_v16 = vsel %vm6_vm0, %v349_v14, %v348_v12  ;;  %s286_s17 = smov 12  ;;  %v352_v19 = vld [vmem:[%s644_s0 + $0x1] ss:$16 sm:%s283_s16]   ;;  %s291_s22 = smov 48 }
  0x1f   :  { %256 = vrot.lane.b32.xlu0 %v255_v13, %s379_s13  ;;  %v351_v17 = vld [vmem:[%s644_s0 + $0x2] ss:$16 sm:%s274_s12]   ;;  %v272_v18 = vsel %vm10_vm1, %v350_v15, %v267_v16  ;;  %s296_s23 = smov 192  ;;  %s2_s28 = smov 3 }
  0x20   :  { %v353_v20 = vld [vmem:[%s644_s0 + $0x1] ss:$16 sm:%s286_s17]   ;;  %v277_v21 = vsel %vm14_vm2, %v351_v17, %v272_v18  ;;  %s380_s29 = smov 16   ;;  %s4_s30 = smov 12  ;;  %v3_v26 = vld [vmem:[%s644_s0] ss:$16 sm:%s2_s28]  }
  0x21   :  { %v289_v22 = vsel %vm6_vm0, %v353_v20, %v352_v19  ;;  %v354_v23 = vld [vmem:[%s644_s0 + $0x1] ss:$16 sm:%s291_s22]   ;;  %278 = vrot.lane.b32.xlu1 %v277_v21, %s380_s29  ;;  %s8_s2 = smov 48  ;;  %s12_s5 = smov 192 }
  0x22   :  { %v355_v24 = vld [vmem:[%s644_s0 + $0x1] ss:$16 sm:%s296_s23]   ;;  %v294_v25 = vsel %vm10_vm1, %v354_v23, %v289_v22  ;;  %v5_v28 = vld [vmem:[%s644_s0] ss:$16 sm:%s4_s30]   ;;  %s381_s10 = smov 8  }
  0x23   :  { %v299_v27 = vsel %vm14_vm2, %v355_v24, %v294_v25  ;;  %v9_v29 = vld [vmem:[%s644_s0] ss:$16 sm:%s8_s2]   ;;  %v7_v30 = vsel %vm6_vm0, %v5_v28, %v3_v26  ;;  %vm302_vm0 = vcmask 130112  }
  0x24   :  { %300 = vrot.lane.b32.xlu0 %v299_v27, %s381_s10  ;;  %v13_v31 = vld [vmem:[%s644_s0] ss:$16 sm:%s12_s5]   ;;  %v11_v32 = vsel %vm10_vm1, %v9_v29, %v7_v30 }
  0x25   :  { %v15_v33 = vsel %vm14_vm2, %v13_v31, %v11_v32 }
  0x26   :  { %17 = vst.msk [vmem:[%s645_s1] sm:$0xff] %vm16_vm3, %v15_v33  }
  0x78   :  { %v37_v34 = vpop.permute.xlu0 %36  }
  0x79   :  { %39 = vst.msk [vmem:[%s645_s1] sm:$0xff] %vm38_vm4, %v37_v34  }
  0x7a   :  { %v81_v35 = vpop.permute.xlu1 %80  }
  0x7d   :  { %v59_v36 = vpop.permute.xlu0 %58  }
  0x7e   :  { %61 = vst.msk [vmem:[%s645_s1] sm:$0xff] %vm60_vm5, %v59_v36  }
  0x7f   :  { %83 = vst.msk [vmem:[%s645_s1] sm:$0xff] %vm82_vm6, %v81_v35   ;;  %v103_v37 = vpop.permute.xlu1 %102  }
  0x80   :  { %105 = vst.msk [vmem:[%s645_s1] sm:$0xff] %vm104_vm7, %v103_v37  }
  0x82   :  { %v125_v38 = vpop.permute.xlu0 %124  }
  0x83   :  { %127 = vst.msk [vmem:[%s645_s1] sm:$0xff] %vm126_vm8, %v125_v38  }
  0x84   :  { %v147_v39 = vpop.permute.xlu1 %146  }
  0x85   :  { %149 = vst.msk [vmem:[%s645_s1] sm:$0xff] %vm148_vm9, %v147_v39  }
  0x87   :  { %v169_v40 = vpop.permute.xlu0 %168  }
  0x88   :  { %171 = vst.msk [vmem:[%s645_s1] sm:$0xff] %vm170_vm10, %v169_v40  }
  0x89   :  { %v191_v41 = vpop.permute.xlu1 %190  }
  0x8a   :  { %193 = vst.msk [vmem:[%s645_s1] sm:$0xff] %vm192_vm11, %v191_v41  }
  0x8c   :  { %v213_v42 = vpop.permute.xlu0 %212  }
  0x8d   :  { %215 = vst.msk [vmem:[%s645_s1] sm:$0xff] %vm214_vm12, %v213_v42  }
  0x8e   :  { %v235_v43 = vpop.permute.xlu1 %234  }
  0x8f   :  { %237 = vst.msk [vmem:[%s645_s1] sm:$0xff] %vm236_vm13, %v235_v43  }
  0x91   :  { %v257_v44 = vpop.permute.xlu0 %256  }
  0x92   :  { %259 = vst.msk [vmem:[%s645_s1] sm:$0xff] %vm258_vm14, %v257_v44  }
  0x93   :  { %v279_v45 = vpop.permute.xlu1 %278  }
  0x94   :  { %281 = vst.msk [vmem:[%s645_s1] sm:$0xff] %vm280_vm15, %v279_v45  }
  0x96   :  { %v301_v46 = vpop.permute.xlu0 %300  }
  0x97   :  { %303 = vst.msk [vmem:[%s645_s1] sm:$0xff] %vm302_vm0, %v301_v46  }

// kernel: conv_block.1
= control target key start
LH: loop header
LB: loop body
LE: loop exit
PB: predicated region body
PF: predicated region fallthrough
CT: control target
= control target key end

     0   :  { %s1472_s18 = smov 0   ;;  %s1474_s19 = smov 0   ;;  %s1712_s0 = inlined_call_operand.vmem [shape: f32[2,16,64], index: 0, kind: input, shape index: {}]   ;;  %s1713_s1 = inlined_call_operand.vmem [shape: f32[3,64,112], index: 1, kind: input, shape index: {}]   ;;  %s1714_s2 = inlined_call_operand.vmem [shape: f32[112,8], index: 2, kind: input, shape index: {}]   ;;  %s1715_s3 = inlined_call_operand.vmem [shape: f32[8,112], index: 3, kind: input, shape index: {}]   ;;  %s1716_s4 = inlined_call_operand.vmem [shape: f32[2,8], index: 4, kind: input, shape index: {}]   ;;  %s1717_s5 = inlined_call_operand.vmem [shape: f32[2,14,112], index: 5, kind: output, shape index: {}]  }
   0x1   :  { %s1476_s20 = smov 0   ;;  %s1478_s21 = smov 0  }
   0x2   :  { %s1480_s22 = smov 0  }
   0x3 LB: > { %s24_s23 = sadd.s32 1, %s1426_s20  ;;  %s27_s24 = sadd.s32 1, %s1430_s21  ;;  %s1434_s22 = sphi %s1480_s22, %s15_s22   ;;  %s1430_s21 = sphi %s1478_s21, %s1721_s21   ;;  %s1426_s20 = sphi %s1476_s20, %s1720_s20   ;;  %s1422_s19 = sphi %s1474_s19, %s1719_s19   ;;  %s1418_s18 = sphi %s1472_s18, %s1718_s18  }
   0x4   : > { %p25_p0 = scmp.ge.s32.totalorder %s24_s23, 2  ;;  %p1021_p1 = scmp.ge.s32.totalorder %s1434_s22, 1 }
   0x5   : > { %p209_p2 = scmp.lt.s32.totalorder %s1434_s22, 5 }
   0x6   : > { %s1723_s23 = smov (%p25_p0, %s24_s23), 0  ;;  %s1725_s24 = smov (!%p25_p0, %s27_s24), %s1430_s21 }
   0x7   : > { %p210_p3 = pnand %p1021_p1, %p209_p2  ;;  %p29_p4 = scmp.ge.s32.totalorder %s1725_s24, 2 }
   0x8   : > { %s240_s25 = ssub.s32 (!%p210_p3), 1, %s1422_s19  ;;  %s249_s26 = smul.u32 (!%p210_p3), %s1418_s18, %s1422_s19 }
   0x9   : > { %s1727_s24 = smov (%p29_p4, %s1725_s24), 0  ;;  %213 = sbr.rel (%p210_p3) target bundleno = 808 (0x328), region = 40 }
   0xa   : > { %s241_s27 = smul.u32 (!%p210_p3), %s1418_s18, %s240_s25  ;;  %p250_p5 = scmp.lt.s32.totalorder (!%p210_p3), %s249_s26, 1 }
   0xb   : > { %p1026_p7 = scmp.ne.s32.totalorder (!%p210_p3), %s1422_s19, 0 }
   0xc   : > { %p242_p6 = scmp.lt.s32.totalorder (!%p210_p3), %s241_s27, 1 }
  0x10   : > { %s1729_s26 = smov (!%p250_p5, %s249_s26), 1  ;;  %s1731_s27 = smov (!%p242_p6, %s241_s27), 1 }
  0x11   : > { %s1060_s28 = sshll.u32 %s1729_s26, 4  ;;  %s1059_s29 = sshll.u32 %s1731_s27, 4 }
  0x12   : > { %s1513_s7 = scalar_lea.vmem %s1717_s5, %s1060_s28  ;;  %s246_s10 = scalar_lea.vmem %s1712_s0, %s1059_s29 }
  0x13   : > { %259 = sbr.rel (%p1026_p7) target bundleno = 555 (0x22b), region = 44  ;;  %p1027_p8 = scmp.ne.s32.totalorder (!%p1026_p7), %s1418_s18, 0 }
  0x1a   : > { %263 = sbr.rel (%p1027_p8) target bundleno = 33 (0x21), region = 48  ;;  %vm264_vm0 = vcmask (!%p1027_p8), 58368   ;;  %v1436_v0 = vmov (!%p1027_p8), 0.0  }
  0x1b   : > { %265 = vst.msk [vmem:[#allocation3] sm:$0x3] (!%p1027_p8), %vm264_vm0, %v1436_v0 }
  0x21 PF: > { %v1028_v1 = vld [vmem:[%s1713_s1 + $0x40] sm:$0xff]  ;;  %v1029_v2 = vld [vmem:[%s1713_s1 + $0x48] sm:$0xff]  ;;  %v1030_v3 = vld [vmem:[%s1713_s1 + $0x50] sm:$0xff]  ;;  %v1437_v10 = vmov 0.0|0.0   ;;  %vm287_vm1 = vcmask 1046528   ;;  %vm291_vm2 = vcmask 523264  }
  0x22   : > { %v1254_v4 = vpack.c.bf16 %v1029_v2, %v1028_v1  ;;  %v1031_v5 = vld [vmem:[%s1713_s1 + $0x58] sm:$0xff]  ;;  %v1032_v7 = vld [vmem:[%s1713_s1 + $0x60] sm:$0xff]  ;;  %v1033_v8 = vld [vmem:[%s1713_s1 + $0x68] sm:$0xff]  ;;  %1302 = vmatprep.subr.bf16.mxu1 %v1437_v10  ;;  %vm459_vm3 = vcmask 1045504   ;;  %vm1438_vm4 = vmmov 0   ;;  %s1050_s26 = sshll.u32 %s1418_s18, 4 }
  0x23   : > { %v1258_v6 = vpack.c.bf16 %v1031_v5, %v1030_v3  ;;  %v1538_v9 = vld [vmem:[%s246_s10] sm:$0xff]  ;;  %v1541_v11 = vld [vmem:[%s246_s10 + $0x8] sm:$0xff]  ;;  %v1262_v14 = vpack.c.bf16 %v1033_v8, %v1032_v7  ;;  %v1034_v15 = vld [vmem:[%s1713_s1 + $0x70] sm:$0xff]  ;;  %v1439_v3 = vmov 0.0   ;;  %vm548_vm5 = vcmask 914432   ;;  %s545_s27 = scalar_lea.vmem [#allocation2], %s1050_s26 }
  0x24   : > { %1255 = vmatprep.subr.bf16.mxu0 %v1254_v4  ;;  %v288_v12 = vrot.slane %v1538_v9, 1  ;;  %v289_v13 = vrot.slane %v1541_v11, 1  ;;  %v1035_v16 = vld [vmem:[%s1713_s1 + $0x78] sm:$0xff]  ;;  %v571_v18 = vld [vmem:[%s1714_s2] sm:$0xff]  ;;  %v572_v20 = vld [vmem:[%s1714_s2 + $0x8] sm:$0xff]  ;;  %v460_v43 = vrot.slane %v1538_v9, 2  ;;  %1210 = vmatprep.mubr.msk.f32.mxu1 %vm1438_vm4, %v1439_v3 }
  0x25   : > { %1257 = vmatpush3.bf16.msra.mxu0 %v1254_v4  ;;  %v1266_v19 = vpack.c.bf16 %v1035_v16, %v1034_v15  ;;  %v573_v21 = vld [vmem:[%s1714_s2 + $0x10] sm:$0xff]  ;;  %v574_v22 = vld [vmem:[%s1714_s2 + $0x18] sm:$0xff]  ;;  %v268_v23 = vld [vmem:[%s1713_s1] sm:$0xff]  ;;  %v1570_v25 = vpack.c.bf16 %v572_v20, %v571_v18  ;;  %v461_v44 = vrot.slane %v1541_v11, 2  ;;  %vm546_vm6 = vcmask 916480  }
  0x26   : > { %1259 = vmatprep.subr.bf16.mxu0 %v1258_v6  ;;  %v290_v17 = vsel %vm287_vm1, %v288_v12, %v289_v13  ;;  %v269_v24 = vld [vmem:[%s1713_s1 + $0x8] sm:$0xff]  ;;  %v1573_v26 = vpack.c.bf16 %v574_v22, %v573_v21  ;;  %v270_v28 = vld [vmem:[%s1713_s1 + $0x10] sm:$0xff]  ;;  %v271_v29 = vld [vmem:[%s1713_s1 + $0x18] sm:$0xff]  ;;  %vm659_vm7 = vcmask 57344  }
  0x27   : > { %1141 = vmatprep.mubr.msk.f32.mxu0 %vm291_vm2, %v290_v17  ;;  %1304 = vmatpush3.bf16.msra.mxu1 %v1570_v25  ;;  %v1270_v27 = vpack.c.bf16 %v269_v24, %v268_v23  ;;  %v575_v30 = vld [vmem:[%s1714_s2 + $0x20] sm:$0xff]  ;;  %v576_v31 = vld [vmem:[%s1714_s2 + $0x28] sm:$0xff]  ;;  %v1274_v32 = vpack.c.bf16 %v271_v29, %v270_v28  ;;  %v274_v37 = vld [vmem:[%s1713_s1 + $0x30] sm:$0xff]  ;;  %v462_v48 = vsel %vm459_vm3, %v460_v43, %v461_v44 }
  0x28   : > { %1305 = vmatprep.subr.bf16.mxu1 %v1437_v10  ;;  %v1590_v33 = vpack.c.bf16 %v576_v31, %v575_v30  ;;  %v272_v34 = vld [vmem:[%s1713_s1 + $0x20] sm:$0xff]  ;;  %v273_v35 = vld [vmem:[%s1713_s1 + $0x28] sm:$0xff]  ;;  %v275_v38 = vld [vmem:[%s1713_s1 + $0x38] sm:$0xff] }
  0x29   : > { %1261 = vmatpush3.bf16.msra.mxu0 %v1258_v6  ;;  %v1278_v36 = vpack.c.bf16 %v273_v35, %v272_v34  ;;  %v1282_v39 = vpack.c.bf16 %v275_v38, %v274_v37  ;;  %v1040_v40 = vld [vmem:[%s1713_s1 + $0x80] sm:$0xff]  ;;  %v1041_v41 = vld [vmem:[%s1713_s1 + $0x88] sm:$0xff]  ;;  %v1042_v45 = vld [vmem:[%s1713_s1 + $0x90] sm:$0xff] }
  0x2a   : > { %1263 = vmatprep.subr.bf16.mxu0 %v1262_v14  ;;  %v1286_v42 = vpack.c.bf16 %v1041_v41, %v1040_v40  ;;  %v1043_v46 = vld [vmem:[%s1713_s1 + $0x98] sm:$0xff]  ;;  %v1044_v49 = vld [vmem:[%s1713_s1 + $0xa0] sm:$0xff]  ;;  %v1045_v50 = vld [vmem:[%s1713_s1 + $0xa8] sm:$0xff] }
  0x2b   : > { %1307 = vmatpush3.bf16.msra.mxu1 %v1573_v26  ;;  %v1290_v47 = vpack.c.bf16 %v1043_v46, %v1042_v45  ;;  %v1294_v51 = vpack.c.bf16 %v1045_v50, %v1044_v49  ;;  %v1046_v52 = vld [vmem:[%s1713_s1 + $0xb0] sm:$0xff]  ;;  %v1047_v53 = vld [vmem:[%s1713_s1 + $0xb8] sm:$0xff]  ;;  %v579_v58 = vld [vmem:[%s1714_s2 + $0x40] sm:$0xff] }
  0x2c   : > { %1308 = vmatprep.subr.bf16.mxu1 %v1437_v10  ;;  %v1298_v54 = vpack.c.bf16 %v1047_v53, %v1046_v52  ;;  %v577_v55 = vld [vmem:[%s1714_s2 + $0x30] sm:$0xff]  ;;  %v578_v56 = vld [vmem:[%s1714_s2 + $0x38] sm:$0xff]  ;;  %v580_v59 = vld [vmem:[%s1714_s2 + $0x48] sm:$0xff] }
  0x2d   : > { %1265 = vmatpush3.bf16.msra.mxu0 %v1262_v14  ;;  %v1312_v57 = vpack.c.bf16 %v578_v56, %v577_v55  ;;  %v1315_v60 = vpack.c.bf16 %v580_v59, %v579_v58  ;;  %v581_v61 = vld [vmem:[%s1714_s2 + $0x50] sm:$0xff]  ;;  %v582_v62 = vld [vmem:[%s1714_s2 + $0x58] sm:$0xff]  ;;  %v583_v0 = vld [vmem:[%s1714_s2 + $0x60] sm:$0xff] }
  0x2e   : > { %1267 = vmatprep.subr.bf16.mxu0 %v1266_v19  ;;  %v1318_v63 = vpack.c.bf16 %v582_v62, %v581_v61  ;;  %v584_v1 = vld [vmem:[%s1714_s2 + $0x68] sm:$0xff]  ;;  %v661_v31 = vld [vmem:[#allocation3 + $0x1] sm:$0x1] }
  0x2f   : > { %1310 = vmatpush3.bf16.msra.mxu1 %v1590_v33  ;;  %v1321_v2 = vpack.c.bf16 %v584_v1, %v583_v0 }
  0x30   : > { %1311 = vmatprep.subr.bf16.mxu1 %v1437_v10 }
  0x31   : > { %1269 = vmatpush3.bf16.msra.mxu0 %v1266_v19 }
  0x32   : > { %1271 = vmatprep.subr.bf16.mxu0 %v1270_v27 }
  0x33   : > { %1313 = vmatpush3.bf16.msra.mxu1 %v1312_v57 }
  0x34   : > { %1142 = vmatmul.mubr.msk.f32.vlgmr.msra.gmra.mrb[0].mxu0 %vm291_vm2, %v289_v13  ;;  %1314 = vmatprep.subr.bf16.mxu1 %v1437_v10 }
  0x35   : > { %1273 = vmatpush3.bf16.msra.mxu0 %v1270_v27  ;;  %1160 = vmatprep.mubr.msk.f32.mxu0 %vm291_vm2, %v1538_v9  ;;  %v570_v27 = vld [vmem:[#allocation3] sm:$0x1] }
  0x36   : > { %1275 = vmatprep.subr.bf16.mxu0 %v1274_v32 }
  0x37   : > { %1316 = vmatpush3.bf16.msra.mxu1 %v1315_v60 }
  0x38   : > { %1317 = vmatprep.subr.bf16.mxu1 %v1437_v10 }
  0x39   : > { %1277 = vmatpush3.bf16.msra.mxu0 %v1274_v32 }
  0x3a   : > { %1279 = vmatprep.subr.bf16.mxu0 %v1278_v36 }
  0x3b   : > { %1319 = vmatpush3.bf16.msra.mxu1 %v1318_v63 }
  0x3c   : > { %1320 = vmatprep.subr.bf16.mxu1 %v1437_v10 }
  0x3d   : > { %1281 = vmatpush3.bf16.msra.mxu0 %v1278_v36 }
  0x3e   : > { %1283 = vmatprep.subr.bf16.mxu0 %v1282_v39 }
  0x3f   : > { %1322 = vmatpush3.bf16.msra.mxu1 %v1321_v2 }
  0x40   : > { %1323 = vmatprep.subr.bf16.mxu1 %v1437_v10 }
  0x41   : > { %1285 = vmatpush3.bf16.msra.mxu0 %v1282_v39 }
  0x42   : > { %1287 = vmatprep.subr.bf16.mxu0 %v1286_v42 }
  0x44   : > { %1161 = vmatmul.mubr.msk.f32.vlgmr.msra.gmra.mrb[0].mxu0 %vm291_vm2, %v1541_v11 }
  0x45   : > { %1289 = vmatpush3.bf16.msra.mxu0 %v1286_v42  ;;  %1179 = vmatprep.mubr.msk.f32.mxu0 %vm291_vm2, %v462_v48 }
  0x46   : > { %1291 = vmatprep.subr.bf16.mxu0 %v1290_v47 }
  0x49   : > { %1293 = vmatpush3.bf16.msra.mxu0 %v1290_v47 }
  0x4a   : > { %1295 = vmatprep.subr.bf16.mxu0 %v1294_v51 }
  0x4d   : > { %1297 = vmatpush3.bf16.msra.mxu0 %v1294_v51 }
  0x4e   : > { %1299 = vmatprep.subr.bf16.mxu0 %v1298_v54 }
  0x51   : > { %1301 = vmatpush3.bf16.msra.mxu0 %v1298_v54 }
  0x54   : > { %1180 = vmatmul.mubr.msk.f32.vlgmr.msra.gmra.mrb[0].mxu0 %vm291_vm2, %v461_v44 }
 0x127   : > { %v1181_v4 = vpop.f32.mrb[0].mxu0 }
 0x128   : > { %549 = vst.msk [vmem:[%s545_s27 + $0x8] sm:$0x3f] %vm548_vm5, %v1181_v4  ;;  %v551_v5 = vsel %vm548_vm5, %v1181_v4, 0.0  ;;  %v560_v6 = vmul.f32 %v1181_v4, %v1181_v4  ;;  %v533_v7 = vpop.f32.mrb[1].mxu0 }
 0x129   : > { %547 = vst.msk [vmem:[%s545_s27] sm:$0xff] %vm546_vm6, %v533_v7  ;;  %v550_v8 = vsel %vm546_vm6, %v533_v7, 0.0  ;;  %v559_v9 = vmul.f32 %v533_v7, %v533_v7 }
 0x12a   : > { %v562_v11 = vsel %vm548_vm5, %v560_v6, 0.0  ;;  %v552_v12 = vadd.f32 %v551_v5, %v550_v8 }
 0x12b   : > { %v561_v13 = vsel %vm546_vm6, %v559_v9, 0.0 }
 0x12c   : > { %v553_v14 = vrot.slane %v552_v12, 4  ;;  %v563_v15 = vadd.f32 %v562_v11, %v561_v13 }
 0x12e   : > { %v554_v16 = vadd.f32 %v553_v14, %v552_v12  ;;  %v564_v21 = vrot.slane %v563_v15, 4 }
 0x130   : > { %v555_v17 = vrot.slane %v554_v16, 2  ;;  %v565_v22 = vadd.f32 %v564_v21, %v563_v15 }
 0x132   : > { %v556_v18 = vadd.f32 %v555_v17, %v554_v16  ;;  %v566_v23 = vrot.slane %v565_v22, 2 }
 0x134   : > { %v557_v19 = vrot.slane %v556_v18, 1  ;;  %v567_v24 = vadd.f32 %v566_v23, %v565_v22 }
 0x136   : > { %v558_v20 = vadd.f32 %v557_v19, %v556_v18 }
 0x138   : > { %1211 = vmatmul.mubr.msk.f32.vlgmr.msra.gmra.mrb[0].mxu1 %vm546_vm6, %v558_v20 }
 0x139   : > { %1325 = vmatpush3.bf16.msra.mxu1 %v1570_v25  ;;  %1241 = vmatprep.mubr.msk.f32.mxu1 %vm1438_vm4, %v1439_v3  ;;  %v568_v25 = vrot.slane %v567_v24, 1 }
 0x13a   : > { %1326 = vmatprep.subr.bf16.mxu1 %v1437_v10 }
 0x13d   : > { %1328 = vmatpush3.bf16.msra.mxu1 %v1573_v26  ;;  %v569_v26 = vadd.f32 %v568_v25, %v567_v24 }
 0x13e   : > { %1329 = vmatprep.subr.bf16.mxu1 %v1437_v10 }
 0x141   : > { %1331 = vmatpush3.bf16.msra.mxu1 %v1590_v33 }
 0x142   : > { %1332 = vmatprep.subr.bf16.mxu1 %v1437_v10 }
 0x145   : > { %1334 = vmatpush3.bf16.msra.mxu1 %v1312_v57 }
 0x146   : > { %1335 = vmatprep.subr.bf16.mxu1 %v1437_v10 }
 0x149   : > { %1337 = vmatpush3.bf16.msra.mxu1 %v1315_v60 }
 0x14a   : > { %1338 = vmatprep.subr.bf16.mxu1 %v1437_v10 }
 0x14d   : > { %1340 = vmatpush3.bf16.msra.mxu1 %v1318_v63 }
 0x14e   : > { %1341 = vmatprep.subr.bf16.mxu1 %v1437_v10 }
 0x151   : > { %1343 = vmatpush3.bf16.msra.mxu1 %v1321_v2 }
 0x154   : > { %1242 = vmatmul.mubr.msk.f32.vlgmr.msra.gmra.mrb[2].mxu1 %vm546_vm6, %v569_v26 }
 0x20b   : > { %v654_v28 = vpop.f32.mrb[0].mxu1 }
 0x20c   : > { %v658_v29 = vadd.f32 %v654_v28, %v570_v27  ;;  %v1212_v30 = vpop.f32.mrb[1].mxu1 }
 0x20e   : > { %660 = vst.msk [vmem:[#allocation3] sm:$0x1] %vm659_vm7, %v658_v29 }
 0x227   : > { %v745_v32 = vpop.f32.mrb[2].mxu1 }
 0x228   : > { %v749_v33 = vadd.f32 %v745_v32, %v661_v31  ;;  %v1243_v34 = vpop.f32.mrb[3].mxu1 }
 0x22a   : > { %750 = vst.msk [vmem:[#allocation3 + $0x1] sm:$0x1] %vm659_vm7, %v749_v33 }
 0x22b PF: > { %p1053_p9 = scmp.ne.s32.totalorder %s1422_s19, 1 }
 0x22c   : > { %v769_v10 = vld [vmem:[%s1715_s3] sm:$0xff] (!%p1053_p9)  ;;  %v1440_v36 = vmov (!%p1053_p9), 0.0   ;;  %vm1441_vm8 = vmmov (!%p1053_p9), 0   ;;  %vm770_vm9 = vcmask (!%p1053_p9), 64512   ;;  %v921_v50 = vlaneseq (!%p1053_p9)  ;;  %s1056_s9 = sshll.u32 (!%p1053_p9), %s1418_s18, 4 }
 0x22d   : > { %754 = sbr.rel (%p1053_p9) target bundleno = 808 (0x328), region = 52  ;;  %v755_v35 = vld [vmem:[#allocation3] sm:$0x1] (!%p1053_p9)  ;;  %1244 = vmatprep.subr.mxu0 (!%p1053_p9), %v1440_v36  ;;  %1246 = vmatprep.mubr.msk.f32.mxu0 (!%p1053_p9), %vm1441_vm8, %v1440_v36  ;;  %v766_v47 = vld [vmem:[%s1716_s4 + $0x1] sm:$0x1] (!%p1053_p9)  ;;  %s918_s10 = scalar_lea.vmem (!%p1053_p9), [#allocation2], %s1056_s9 }
 0x22e   : > { %v756_v37 = vmul.f32 (!%p1053_p9), 0.0025510204, %v755_v35  ;;  %1245 = vmatpush3.msra.mxu0 (!%p1053_p9), %v769_v10  ;;  %1249 = vmatprep.subr.mxu1 (!%p1053_p9), %v1440_v36  ;;  %v762_v44 = vld [vmem:[%s1716_s4] sm:$0x1] (!%p1053_p9)  ;;  %v922_v51 = vshrl.u32 (!%p1053_p9), %v921_v50, 7  ;;  %vm939_vm10 = vcmask (!%p1053_p9), 916480  }
 0x22f   : > { %1250 = vmatpush3.msra.mxu1 (!%p1053_p9), %v769_v10  ;;  %1251 = vmatprep.mubr.msk.f32.mxu1 (!%p1053_p9), %vm1441_vm8, %v1440_v36  ;;  %v919_v54 = vld [vmem:[%s918_s10] sm:$0xff] (!%p1053_p9)  ;;  %v920_v55 = vld [vmem:[%s918_s10 + $0x8] sm:$0x3f] (!%p1053_p9)  ;;  %vm941_vm11 = vcmask (!%p1053_p9), 914432  }
 0x230   : > { %v759_v40 = vmul.f32 (!%p1053_p9), %v756_v37, %v756_v37  ;;  %v923_v52 = vsub.s32 (!%p1053_p9), 0, %v922_v51 }
 0x231   : > { %v757_v38 = vld [vmem:[#allocation3 + $0x1] sm:$0x1] (!%p1053_p9) }
 0x232   : > { %v758_v39 = vmul.f32 (!%p1053_p9), 0.0025510204, %v757_v38 }
 0x234   : > { %v760_v41 = vsub.f32 %v758_v39, %v759_v40 }
 0x236   : > { %v761_v42 = vmax.f32 %v760_v41, 0.0 }
 0x238   : > { %v763_v43 = vadd.f32 1e-05, %v761_v42 }
 0x23a   : > { %1394 = vrsqrt.f32 %v763_v43 }
 0x244   : > { %v1395_v45 = vpop.eup %1394 }
 0x245   : > { %v765_v46 = vmul.f32 %v1395_v45, %v762_v44 }
 0x247   : > { %1247 = vmatmul.mubr.msk.f32.vlgmr.msra.gmra.mrb[0].mxu0 %vm770_vm9, %v765_v46  ;;  %v767_v48 = vmul.f32 %v765_v46, %v756_v37 }
 0x249   : > { %v768_v49 = vsub.f32 %v766_v47, %v767_v48 }
 0x24b   : > { %1252 = vmatmul.mubr.msk.f32.vlgmr.msra.gmra.mrb[0].mxu1 %vm770_vm9, %v768_v49 }
 0x31a   : > { %v840_v53 = vpop.f32.mrb[0].mxu0 }
 0x31b   : > { %v924_v56 = vrot.slane %v840_v53, %v923_v52  ;;  %v1248_v57 = vpop.f32.mrb[1].mxu0 }
 0x31d   : > { %v925_v58 = vmul.f32 %v924_v56, %v919_v54  ;;  %v926_v59 = vmul.f32 %v924_v56, %v920_v55 }
 0x31e   : > { %v913_v60 = vpop.f32.mrb[0].mxu1 }
 0x31f   : > { %v930_v61 = vrot.slane %v913_v60, %v923_v52  ;;  %v1253_v62 = vpop.f32.mrb[1].mxu1 }
 0x321   : > { %v931_v63 = vadd.f32 %v930_v61, %v925_v58  ;;  %v932_v0 = vadd.f32 %v930_v61, %v926_v59 }
 0x323   : > { %vm933_vm12 = vcmp.gt.f32.partialorder %v931_v63, 0.0  ;;  %vm934_vm13 = vcmp.gt.f32.partialorder %v932_v0, 0.0  ;;  %v935_v1 = vmul.f32 0.2, %v931_v63  ;;  %v936_v2 = vmul.f32 0.2, %v932_v0 }
 0x325   : > { %v937_v3 = vsel %vm933_vm12, %v931_v63, %v935_v1  ;;  %v938_v4 = vsel %vm934_vm13, %v932_v0, %v936_v2 }
 0x326   : > { %940 = vst.msk [vmem:[%s1513_s7] sm:$0xff] %vm939_vm10, %v937_v3 }
 0x327   : > { %942 = vst.msk [vmem:[%s1513_s7 + $0x8] sm:$0x3f] %vm941_vm11, %v938_v4 }
 0x328 PF: > { %s15_s22 = sadd.s32 1, %s1434_s22   ;;  %s1718_s18 = smov %s1426_s20 }
 0x329   : > { %p12_p10 = scmp.ge.s32.totalorder %s15_s22, 6   ;;  %s1719_s19 = smov %s1430_s21 }
 0x32a   : > { %s1720_s20 = smov %s1723_s23  ;;  %s1721_s21 = smov %s1727_s24 }
 0x32b   :  { %14 = sbr.rel (!%p12_p10) target bundleno = 3 (0x3), region = 86 }

</bundles_post_ra>
